<compile_context>
chip_gen: v7x
topology: tpu7x:2x2x1
jax: 0.10.0
libtpu: 0.0.40
codegen_flags: <defaults>
</compile_context>

<pallas_src>
import functools

import jax
import jax.numpy as jnp
from jax.experimental import pallas as pl
from jax.experimental.pallas import tpu as pltpu


def _softmax_kernel(x_ref, o_ref, *, pack, d):
    """Row softmax over segments of length d (pack segments per 128-lane row)."""
    x = x_ref[...].astype(jnp.float32)
    tr = x.shape[0]
    if pack > 1:
        # TODO(synk): stay lane-dense and do the segmented sum with a constant
        # block-diagonal matmul on the otherwise-idle MXU instead of this
        # relayout (needs a per-segment max guard for fully-masked segments).
        x = x.reshape(tr, pack, d)
    x_max = jnp.max(x, axis=-1, keepdims=True)
    e = jnp.exp(x - x_max)
    s = jnp.sum(e, axis=-1, keepdims=True)
    out = e * pl.reciprocal(s, approx=True)   # EUP slot instead of vector divide
    if pack > 1:
        out = out.reshape(tr, pack * d)
    o_ref[...] = out.astype(o_ref.dtype)


def _masked_softmax_kernel(x_ref, m_ref, o_ref, *, mask_value, pack, d):
    """Masked row softmax. m_ref is a (tr, W) int8 tile or a shared (1, W) row."""
    x = x_ref[...].astype(jnp.float32)
    keep = m_ref[...] != 0                     # broadcasts (1, W) against (tr, W)
    x = jnp.where(keep, x, jnp.float32(mask_value))  # masked_fill(~mask, finfo.min)
    tr = x.shape[0]
    if pack > 1:
        x = x.reshape(tr, pack, d)
    x_max = jnp.max(x, axis=-1, keepdims=True)
    e = jnp.exp(x - x_max)
    s = jnp.sum(e, axis=-1, keepdims=True)
    out = e * pl.reciprocal(s, approx=True)
    if pack > 1:
        out = out.reshape(tr, pack * d)
    o_ref[...] = out.astype(o_ref.dtype)


def _vmem_capacity_bytes():
    try:
        return int(pltpu.get_tpu_info().vmem_capacity_bytes)
    except Exception:
        return 128 * 1024 * 1024   # v5e/v6e default


def _round_up(v, m):
    return ((v + m - 1) // m) * m


def pallas_softmax(x, mask=None, dim=-1, *, row_tile=None):
    """Equivalent of the PyTorch Softmax(dim).forward(x, mask)."""
    ndim = x.ndim
    dim = dim % ndim

    # PyTorch fills masked positions with finfo(x.dtype).min (float inputs only;
    # torch softmax rejects integer inputs, so no integer branch here).
    mask_value = float(jnp.finfo(x.dtype).min)

    # Move the softmax axis last, flatten the rest into rows.
    # TODO(synk): for dim != last, reduce along the sublane axis in-kernel
    # instead of paying this HBM transpose on input and again on output.
    x_t = jnp.moveaxis(x, dim, -1)
    moved_shape = x_t.shape
    D = moved_shape[-1]
    x2 = x_t.reshape(-1, D)
    R = x2.shape[0]

    # ---- mask handling (avoid materializing a broadcast copy when possible) --
    mask_mode = None
    m2 = None
    if mask is not None:
        m = jnp.asarray(mask)
        if m.ndim < ndim:
            m = m.reshape((1,) * (ndim - m.ndim) + m.shape)
        if all(m.shape[a] == 1 for a in range(ndim) if a != dim):
            # Mask only varies along the softmax axis: feed one shared row and
            # replicate it through the BlockSpec instead of broadcasting in HBM.
            mask_mode = "row"
            row = m.reshape(-1) != 0
            if row.shape[0] == 1:
                row = jnp.broadcast_to(row, (D,))
            m2 = row.astype(jnp.int32).reshape(1, D)
        else:
            mask_mode = "full"
            mb = jnp.broadcast_to(m, x.shape)
            m2 = (jnp.moveaxis(mb, dim, -1) != 0).astype(jnp.int8).reshape(-1, D)

    # ---- lane packing for narrow softmax widths (copy-free only) -------------
    pack = 1
    if D < 128 and 128 % D == 0 and R % (128 // D) == 0:
        pack = 128 // D
    # TODO(synk): pack non-divisor widths (48, 100, ...) once a copy-free ragged
    # remainder path exists; today those stay lane-sparse to avoid an HBM pad.
    W = pack * D
    if pack > 1:
        x2 = x2.reshape(R // pack, W)          # contiguous reshape, no copy
        if mask_mode == "full":
            m2 = m2.reshape(R // pack, W)
        elif mask_mode == "row":
            m2 = jnp.tile(m2, (1, pack))       # tiny (1, 128) shared row
    n_rows = x2.shape[0]

    # ---- row-tile sizing (generation aware) -----------------------------------
    itemsize = jnp.dtype(x.dtype).itemsize
    mask_b = 1 if mask_mode == "full" else 0
    bpe = 2 * itemsize + mask_b                # in + out (+ mask) bytes / element
    vmem_cap = _vmem_capacity_bytes()
    if vmem_cap <= 80 * 1024 * 1024:           # v7x-class: 64 MiB VMEM per TC
        budget = 4 * 1024 * 1024
        vmem_limit = 32 * 1024 * 1024
    else:                                      # v5e / v6e: 128 MiB VMEM
        budget = 8 * 1024 * 1024
        vmem_limit = 64 * 1024 * 1024

    if row_tile is not None:
        tr = max(1, int(row_tile))
    else:
        tr_max = min(budget // max(W * bpe, 1), 8192)
        if tr_max >= 32:
            tr_max = (tr_max // 32) * 32
        else:
            tr_max = max(8, (tr_max // 8) * 8)  # only for extremely wide rows
        # Keep >= ~8 grid steps so the software pipeline (and v7x's second
        # TensorCore via "parallel" semantics) stays busy.
        tr_target = _round_up(pl.cdiv(n_rows, 8), 32)
        tr = min(tr_max, tr_target)
    if tr >= n_rows:
        tr = n_rows                            # single tile; full-dim tiling exception
    elif tr >= 32:
        tr = (tr // 32) * 32                   # LCM of f32/bf16/int8 sublane tiles

    grid = (pl.cdiv(n_rows, tr),)              # ragged tail handled by Pallas, no pad

    if mask_mode is None:
        kernel = functools.partial(_softmax_kernel, pack=pack, d=D)
        in_specs = [pl.BlockSpec((tr, W), lambda i: (i, 0))]
        operands = (x2,)
    else:
        kernel = functools.partial(
            _masked_softmax_kernel, mask_value=mask_value, pack=pack, d=D)
        if mask_mode == "full":
            m_spec = pl.BlockSpec((tr, W), lambda i: (i, 0))
        else:                                  # same shared row for every step
            m_spec = pl.BlockSpec((1, W), lambda i: (0, 0))
        in_specs = [pl.BlockSpec((tr, W), lambda i: (i, 0)), m_spec]
        operands = (x2, m2)

    out2 = pl.pallas_call(
        kernel,
        out_shape=jax.ShapeDtypeStruct((n_rows, W), x.dtype),
        grid_spec=pltpu.PrefetchScalarGridSpec(
            num_scalar_prefetch=0,
            grid=grid,
            in_specs=in_specs,
            out_specs=pl.BlockSpec((tr, W), lambda i: (i, 0)),
        ),
        compiler_params=pltpu.CompilerParams(
            dimension_semantics=("parallel",),
            vmem_limit_bytes=vmem_limit,
        ),
    )(*operands)

    if pack > 1:
        out2 = out2.reshape(R, D)
    out = out2.reshape(moved_shape)
    return jnp.moveaxis(out, -1, dim)


def _reference_softmax(x, mask=None, dim=-1):
    # Pure-JAX reference matching the PyTorch module semantics.
    if mask is not None:
        mask = jnp.broadcast_to(jnp.asarray(mask), x.shape).astype(bool)
        x = jnp.where(mask, x, jnp.finfo(x.dtype).min).astype(x.dtype)
    return jax.nn.softmax(x, axis=dim)


if __name__ == "__main__":
    key = jax.random.PRNGKey(0)
    kx, km, kx2, km2, kx3 = jax.random.split(key, 5)
    # approx reciprocal puts ~1e-4-class relative error on the denominator.
    TOL = dict(atol=5e-3, rtol=5e-3)

    # 1) NCHW-like input, softmax over last axis (D=16 -> lane-packed x8),
    #    element-wise mask with the same shape as x.
    x = jax.random.normal(kx, (2, 4, 16, 16), dtype=jnp.float32)
    mask = jax.random.uniform(km, (2, 4, 16, 16)) > 0.3
    out = jax.block_until_ready(pallas_softmax(x, mask=mask, dim=-1))
    ref = _reference_softmax(x, mask=mask, dim=-1)
    assert out.shape == x.shape and out.dtype == x.dtype
    assert jnp.allclose(out, ref, **TOL)

    # 2) mask=None path (maskless kernel, no mask traffic).
    out2 = jax.block_until_ready(pallas_softmax(x, mask=None, dim=-1))
    assert jnp.allclose(out2, _reference_softmax(x, mask=None, dim=-1), **TOL)

    # 3) broadcastable mask that only varies along the softmax axis ->
    #    fed un-broadcast as one shared (1, D) row (no HBM broadcast copy).
    row_mask = (jnp.arange(16) % 5) != 0
    out3 = jax.block_until_ready(pallas_softmax(x, mask=row_mask, dim=-1))
    assert jnp.allclose(out3, _reference_softmax(x, mask=row_mask, dim=-1), **TOL)

    # 4) non-last softmax dim (moveaxis path) with an element-wise mask.
    out4 = jax.block_until_ready(pallas_softmax(x, mask=mask, dim=1))
    assert jnp.allclose(out4, _reference_softmax(x, mask=mask, dim=1), **TOL)

    # 5) multi-step grid with a ragged last tile (240 rows, tr=32) - no pad copies.
    x5 = jax.random.normal(kx2, (2, 3, 40, 128), dtype=jnp.float32)
    out5 = jax.block_until_ready(pallas_softmax(x5, dim=-1))
    assert jnp.allclose(out5, _reference_softmax(x5, dim=-1), **TOL)

    # 6) multi-step masked grid (256 rows, 8 tiles) exercising int8 mask tiling.
    x6 = jax.random.normal(kx3, (2, 128, 128), dtype=jnp.float32)
    m6 = jax.random.uniform(km2, (2, 128, 128)) > 0.5
    out6 = jax.block_until_ready(pallas_softmax(x6, mask=m6, dim=-1))
    assert jnp.allclose(out6, _reference_softmax(x6, mask=m6, dim=-1), **TOL)

    print("KERNEL_OK")
</pallas_src>

<mosaic_0001>
module attributes {stable_mosaic.version = 11 : i64} {
  func.func @_masked_softmax_kernel(%arg0: i32, %arg1: memref<16x128xf32, #tpu.memory_space<vmem>>, %arg2: memref<16x128xi8, #tpu.memory_space<vmem>>, %arg3: memref<16x128xf32, #tpu.memory_space<vmem>>) attributes {dimension_semantics = [#tpu.dimension_semantics<parallel>], iteration_bounds = array<i64: 1>, scalar_prefetch = 0 : i64, scratch_operands = 0 : i64, tpu.core_type = #tpu.core_type<tc>, window_params = [{transform_indices = @transform_0, window_bounds = array<i64: 16, 128>}, {transform_indices = @transform_1, window_bounds = array<i64: 16, 128>}, {transform_indices = @transform_2, window_bounds = array<i64: 16, 128>}]} {
    %c0 = arith.constant 0 : index
    %c0_0 = arith.constant 0 : index
    %0 = vector.load %arg1[%c0, %c0_0] : memref<16x128xf32, #tpu.memory_space<vmem>>, vector<16x128xf32>
    %c0_1 = arith.constant 0 : index
    %c0_2 = arith.constant 0 : index
    %1 = vector.load %arg2[%c0_1, %c0_2] : memref<16x128xi8, #tpu.memory_space<vmem>>, vector<16x128xi8>
    %c0_i8 = arith.constant 0 : i8
    %2 = vector.broadcast %c0_i8 : i8 to vector<16x128xi8>
    %3 = arith.cmpi ne, %1, %2 : vector<16x128xi8>
    %cst = arith.constant -3.40282347E+38 : f32
    %4 = vector.broadcast %cst : f32 to vector<16x128xf32>
    %5 = arith.select %3, %0, %4 : vector<16x128xi1>, vector<16x128xf32>
    %6 = vector.shape_cast %5 : vector<16x128xf32> to vector<16x8x16xf32>
    %cst_3 = arith.constant dense<0xFF800000> : vector<16x8xf32>
    %7 = vector.multi_reduction <maximumf>, %6, %cst_3 [2] : vector<16x8x16xf32> to vector<16x8xf32>
    %8 = vector.shape_cast %7 : vector<16x8xf32> to vector<16x8x1xf32>
    %9 = vector.broadcast %8 : vector<16x8x1xf32> to vector<16x8x16xf32>
    %10 = arith.subf %6, %9 : vector<16x8x16xf32>
    %11 = math.exp %10 : vector<16x8x16xf32>
    %cst_4 = arith.constant dense<0.000000e+00> : vector<16x8xf32>
    %12 = vector.multi_reduction <add>, %11, %cst_4 [2] : vector<16x8x16xf32> to vector<16x8xf32>
    %13 = vector.shape_cast %12 : vector<16x8xf32> to vector<16x8x1xf32>
    %14 = tpu.reciprocal %13 {approx = true} : vector<16x8x1xf32> -> vector<16x8x1xf32>
    %15 = vector.broadcast %14 : vector<16x8x1xf32> to vector<16x8x16xf32>
    %16 = arith.mulf %11, %15 : vector<16x8x16xf32>
    %17 = vector.shape_cast %16 : vector<16x8x16xf32> to vector<16x128xf32>
    %c0_5 = arith.constant 0 : index
    %c0_6 = arith.constant 0 : index
    %18 = vector.load %arg3[%c0_5, %c0_6] : memref<16x128xf32, #tpu.memory_space<vmem>>, vector<16x128xf32>
    tpu.vector_store %arg3[%c0_5, %c0_6], %17 {strides = array<i32>} : memref<16x128xf32, #tpu.memory_space<vmem>>, vector<16x128xf32>,
    return
  }
  func.func @transform_0(%arg0: i32) -> (i32, i32) {
    %c0_i32 = arith.constant 0 : i32
    %c0_i32_0 = arith.constant 0 : i32
    return %arg0, %c0_i32 : i32, i32
  }
  func.func @transform_1(%arg0: i32) -> (i32, i32) {
    %c0_i32 = arith.constant 0 : i32
    %c0_i32_0 = arith.constant 0 : i32
    return %arg0, %c0_i32 : i32, i32
  }
  func.func @transform_2(%arg0: i32) -> (i32, i32) {
    %c0_i32 = arith.constant 0 : i32
    %c0_i32_0 = arith.constant 0 : i32
    return %arg0, %c0_i32 : i32, i32
  }
}

</mosaic_0001>

<bundles_post_ra>
// kernel: tpu_custom_call.1
= control target key start
LH: loop header
LB: loop body
LE: loop exit
PB: predicated region body
PF: predicated region fallthrough
CT: control target
= control target key end

     0   :  { %7 = vsyncpa [#allocation3], 0  ;;  %s1468_s0 = inlined_call_operand.hbm [shape: f32[16,128], index: 0, kind: input, shape index: {}]   ;;  %s1469_s1 = inlined_call_operand.hbm [shape: s8[16,128], index: 1, kind: input, shape index: {}]   ;;  %s1470_s2 = inlined_call_operand.hbm [shape: f32[16,128], index: 2, kind: output, shape index: {}]  }
   0x1   :  { %8 = vsyncpa [#allocation6], 0 }
   0x2   :  { %9 = vsyncpa [#allocation4], 0  ;;  %s1069_s9 = smov [#allocation2]   ;;  %s997_s13 = scalar_lea.hbm %s1468_s0, 256 }
   0x3   :  { %s15_s10 = sshll.u32 %s1069_s9, 4  ;;  %p998_p0 = scmp.ne.s32.totalorder %s1468_s0, %s997_s13  ;;  %s16_s10 = int_to_ptr.vmem [resolvable:$true] %s15_s10 }
   0x4   :  { %p1001_p1 = scmp.lt.u32.totalorder %s997_s13, %s1468_s0 }
   0x6   :  { %p1003_p2 = pnand %p1001_p1, %p998_p0 }
   0x8   :  { %1006 = shalt.err (!%p1003_p2)
}
   0x9   :  { %s1007_s18 = scalar_lea.vmem %s16_s10, 256  ;;  %p1012_p4 = scmp.lt.s32.totalorder %s16_s10, %s16_s10 }
   0xa   :  { %p1008_p3 = scmp.ne.s32.totalorder %s16_s10, %s1007_s18  ;;  %p1013_p5 = scmp.lt.s32.totalorder %s1007_s18, %s1007_s18 }
   0xc   :  { %p1014_p6 = por %p1013_p5, %p1012_p4 }
   0xe   :  { %p1015_p7 = pnand %p1014_p6, %p1008_p3 }
  0x10   :  { %1018 = shalt.err (!%p1015_p7)
}
  0x11   :  { %s1070_s19 = smov 128   ;;  %s1071_s20 = smov 8  }
  0x12   :  { %21 = dma.hbm_to_vmem [thread:$0]  %s1468_s0, 256, %s16_s10, [#allocation3], %s1070_s19, %s1070_s19, %s1071_s20  }
  0x13   :  { %s1072_s23 = smov [#allocation5]   ;;  %s1019_s27 = scalar_lea.hbm %s1469_s1, 64 }
  0x14   :  { %s27_s24 = sshll.u32 %s1072_s23, 4  ;;  %p1020_p8 = scmp.ne.s32.totalorder %s1469_s1, %s1019_s27  ;;  %s28_s24 = int_to_ptr.vmem [resolvable:$true] %s27_s24 }
  0x15   :  { %p1023_p9 = scmp.lt.u32.totalorder %s1019_s27, %s1469_s1 }
  0x17   :  { %p1025_p10 = pnand %p1023_p9, %p1020_p8 }
  0x19   :  { %1028 = shalt.err (!%p1025_p10)
}
  0x1a   :  { %s1029_s4 = scalar_lea.vmem %s28_s24, 64  ;;  %p1034_p12 = scmp.lt.s32.totalorder %s28_s24, %s28_s24 }
  0x1b   :  { %p1030_p11 = scmp.ne.s32.totalorder %s28_s24, %s1029_s4  ;;  %p1035_p13 = scmp.lt.s32.totalorder %s1029_s4, %s1029_s4 }
  0x1d   :  { %p1036_p0 = por %p1035_p13, %p1034_p12 }
  0x1f   :  { %p1037_p1 = pnand %p1036_p0, %p1030_p11 }
  0x21   :  { %1040 = shalt.err (!%p1037_p1)
}
  0x22   :  { %s1073_s0 = smov 32   ;;  %s1074_s5 = smov 2  }
  0x23   :  { %33 = dma.hbm_to_vmem [thread:$0]  %s1469_s1, 64, %s28_s24, [#allocation6], %s1073_s0, %s1073_s0, %s1074_s5  }
  0x24   :  { %1063 = dma.done.wait [#allocation3], 256  }
  0x25   :  { %1064 = vsyncadd [#allocation3], 4294967040 }
  0x26   :  { %1065 = dma.done.wait [#allocation6], 64  }
  0x27   :  { %1066 = vsyncadd [#allocation6], 4294967232  ;;  %v44_v0 = vld [vmem:[#allocation5] sm:$0x3]  ;;  %v45_v1 = vld [vmem:[#allocation5 + $0x2] sm:$0x3]  ;;  %v105_v19 = vlaneseq }
  0x28   :  { %vm46_vm0 = vnez %v44_v0  ;;  %v1075_v2 = vmov 0   ;;  %vm47_vm1 = vnez %v45_v1  ;;  %v42_v4 = vld [vmem:[#allocation2] sm:$0xff]  ;;  %v43_v8 = vld [vmem:[#allocation2 + $0x8] sm:$0xff]  ;;  %s1076_s8 = smov 96   ;;  %s1077_s1 = smov 112   ;;  %vm372_vm4 = vcmask 130048  }
  0x29   :  { %v48_v3 = vsel %vm46_vm0, 16843009, %v1075_v2  ;;  %v49_v6 = vsel %vm47_vm1, 16843009, %v1075_v2  ;;  %s1078_s9 = smov 80   ;;  %s1079_s10 = smov 64  }
  0x2a   :  { %v50_v5 = vunpack.c.0.s8 %v48_v3  ;;  %v51_v7 = vunpack.c.0.s8 %v49_v6  ;;  %s1080_s11 = smov 48   ;;  %s1081_s12 = smov 16   ;;  %v1082_v17 = vmov 1983009808   ;;  %v106_v23 = vshrl.u32 %v105_v19, 7 }
  0x2b   :  { %v103_v18 = vunpack.c.l.s4 %v1082_v17  ;;  %v1083_v26 = vmov 1934713408   ;;  %vm879_vm5 = vcmask 261120   ;;  %vm882_vm6 = vcmask 392192   ;;  %s1084_s13 = smov [#allocation7]  }
  0x2c   :  { %vm52_vm2 = vcmp.ne.s32.totalorder %v50_v5, 0  ;;  %vm53_vm3 = vcmp.ne.s32.totalorder %v51_v7, 0  ;;  %v167_v27 = vunpack.c.l.s4 %v1083_v26  ;;  %vm885_vm7 = vcmask 523264   ;;  %s904_s14 = sshll.u32 %s1084_s13, 4  ;;  %s905_s14 = int_to_ptr.vmem [resolvable:$true] %s904_s14 }
  0x2d   :  { %v54_v9 = vsel %vm52_vm2, %v42_v4, -3.4028235e+38  ;;  %v1131_v10 = vsel %vm53_vm3, %v43_v8, -3.4028235e+38  ;;  %v104_v22 = vunpack.c.0.s8 %v103_v18  ;;  %vm888_vm8 = vcmask 654336   ;;  %s1041_s15 = scalar_lea.vmem %s905_s14, 256  ;;  %p1046_p3 = scmp.lt.s32.totalorder %s905_s14, %s905_s14 }
  0x2e   :  { %64 = vrot.lane.b32.xlu1 %v54_v9, %s1076_s8  ;;  %58 = vrot.lane.b32.xlu0 %v54_v9, %s1077_s1  ;;  %v168_v35 = vunpack.c.0.s8 %v167_v27  ;;  %vm891_vm9 = vcmask 785408   ;;  %vm894_vm10 = vcmask 916480   ;;  %p1042_p2 = scmp.ne.s32.totalorder %s905_s14, %s1041_s15  ;;  %p1047_p4 = scmp.lt.s32.totalorder %s1041_s15, %s1041_s15 }
  0x2f   :  { %v1162_v28 = vsub.s32 %v104_v22, %v106_v23 }
  0x30   :  { %v1174_v53 = vsub.s32 %v168_v35, %v106_v23  ;;  %p1048_p5 = por %p1047_p4, %p1046_p3 }
  0x32   :  { %66 = vrot.lane.b32.xlu1 %v1131_v10, %s1076_s8  ;;  %60 = vrot.lane.b32.xlu0 %v1131_v10, %s1077_s1  ;;  %p1049_p6 = pnand %p1048_p5, %p1042_p2 }
  0x36   :  { %72 = vrot.lane.b32.xlu1 %v1131_v10, %s1078_s9  ;;  %70 = vrot.lane.b32.xlu0 %v54_v9, %s1078_s9 }
  0x3a   :  { %78 = vrot.lane.b32.xlu1 %v1131_v10, %s1079_s10  ;;  %76 = vrot.lane.b32.xlu0 %v54_v9, %s1079_s10 }
  0x3e   :  { %84 = vrot.lane.b32.xlu1 %v1131_v10, %s1080_s11  ;;  %82 = vrot.lane.b32.xlu0 %v54_v9, %s1080_s11 }
  0x42   :  { %90 = vrot.lane.b32.xlu1 %v1131_v10, %s1073_s0  ;;  %88 = vrot.lane.b32.xlu0 %v54_v9, %s1073_s0 }
  0x46   :  { %96 = vrot.lane.b32.xlu1 %v1131_v10, %s1081_s12  ;;  %94 = vrot.lane.b32.xlu0 %v54_v9, %s1081_s12 }
  0xa0   :  { %v65_v11 = vpop.permute.xlu1 %64  ;;  %v59_v12 = vpop.permute.xlu0 %58 }
  0xa1   :  { %v100_v29 = vcombine.low %v54_v9, %v65_v11  ;;  %v101_v33 = vcombine.high %v54_v9, %v65_v11 }
  0xa3   :  { %v108_v36 = vrot.slane %v100_v29, %v1162_v28  ;;  %v115_v44 = vrot.slane %v101_v33, %v1162_v28 }
  0xa4   :  { %v1152_v13 = vpop.permute.xlu1 %66  ;;  %v1154_v14 = vpop.permute.xlu0 %60 }
  0xa5   :  { %v236_v54 = vcombine.low %v1131_v10, %v1152_v13 }
  0xa7   :  { %v244_v4 = vrot.slane %v236_v54, %v1162_v28 }
  0xa8   :  { %v1156_v15 = vpop.permute.xlu1 %72  ;;  %v71_v16 = vpop.permute.xlu0 %70 }
  0xa9   :  { %v116_v30 = vcombine.low %v59_v12, %v71_v16  ;;  %v117_v34 = vcombine.high %v59_v12, %v71_v16  ;;  %v252_v55 = vcombine.low %v1154_v14, %v1156_v15 }
  0xab   :  { %v124_v37 = vrot.slane %v116_v30, %v1162_v28  ;;  %v131_v45 = vrot.slane %v117_v34, %v1162_v28  ;;  %v260_v5 = vrot.slane %v252_v55, %v1162_v28 }
  0xac   :  { %v1158_v20 = vpop.permute.xlu1 %78  ;;  %v77_v21 = vpop.permute.xlu0 %76 }
  0xad   :  { %v164_v50 = vcombine.low %v108_v36, %v124_v37  ;;  %v165_v56 = vcombine.high %v108_v36, %v124_v37  ;;  %v180_v57 = vcombine.low %v115_v44, %v131_v45  ;;  %v181_v6 = vcombine.high %v115_v44, %v131_v45 }
  0xae   :  { %v301_v34 = vcombine.high %v244_v4, %v260_v5 }
  0xaf   :  { %v172_v0 = vrot.slane %v164_v50, %v1174_v53  ;;  %v188_v9 = vrot.slane %v180_v57, %v1174_v53  ;;  %v179_v11 = vrot.slane %v165_v56, %v1174_v53  ;;  %v195_v26 = vrot.slane %v181_v6, %v1174_v53 }
  0xb0   :  { %v1160_v24 = vpop.permute.xlu1 %84  ;;  %v83_v25 = vpop.permute.xlu0 %82 }
  0xb4   :  { %v91_v31 = vpop.permute.xlu1 %90  ;;  %v89_v32 = vpop.permute.xlu0 %88 }
  0xb5   :  { %v132_v38 = vcombine.low %v77_v21, %v89_v32  ;;  %v133_v39 = vcombine.high %v77_v21, %v89_v32  ;;  %v268_v46 = vcombine.low %v1158_v20, %v91_v31  ;;  %v269_v12 = vcombine.high %v1158_v20, %v91_v31 }
  0xb6   :  { %v237_v20 = vcombine.high %v1131_v10, %v1152_v13 }
  0xb7   :  { %v140_v51 = vrot.slane %v132_v38, %v1162_v28  ;;  %v147_v52 = vrot.slane %v133_v39, %v1162_v28  ;;  %v276_v61 = vrot.slane %v268_v46, %v1162_v28  ;;  %v283_v27 = vrot.slane %v269_v12, %v1162_v28 }
  0xb8   :  { %v97_v40 = vpop.permute.xlu1 %96  ;;  %v95_v41 = vpop.permute.xlu0 %94 }
  0xb9   :  { %v148_v42 = vcombine.low %v83_v25, %v95_v41  ;;  %v149_v43 = vcombine.high %v83_v25, %v95_v41  ;;  %v284_v47 = vcombine.low %v1160_v24, %v97_v40  ;;  %v285_v16 = vcombine.high %v1160_v24, %v97_v40 }
  0xba   :  { %v253_v24 = vcombine.high %v1154_v14, %v1156_v15  ;;  %v300_v25 = vcombine.low %v244_v4, %v260_v5  ;;  %v251_v14 = vrot.slane %v237_v20, %v1162_v28 }
  0xbb   :  { %v156_v48 = vrot.slane %v148_v42, %v1162_v28  ;;  %v163_v49 = vrot.slane %v149_v43, %v1162_v28  ;;  %v292_v62 = vrot.slane %v284_v47, %v1162_v28  ;;  %v299_v29 = vrot.slane %v285_v16, %v1162_v28 }
  0xbc   :  { %v267_v15 = vrot.slane %v253_v24, %v1162_v28  ;;  %v308_v35 = vrot.slane %v300_v25, %v1174_v53  ;;  %v315_v43 = vrot.slane %v301_v34, %v1174_v53 }
  0xbd   :  { %v196_v58 = vcombine.low %v140_v51, %v156_v48  ;;  %v197_v59 = vcombine.high %v140_v51, %v156_v48  ;;  %v212_v60 = vcombine.low %v147_v52, %v163_v49  ;;  %v213_v63 = vcombine.high %v147_v52, %v163_v49 }
  0xbe   :  { %v332_v17 = vcombine.low %v276_v61, %v292_v62  ;;  %v333_v30 = vcombine.high %v276_v61, %v292_v62  ;;  %v348_v36 = vcombine.low %v283_v27, %v299_v29  ;;  %v316_v42 = vcombine.low %v251_v14, %v267_v15 }
  0xbf   :  { %v204_v1 = vrot.slane %v196_v58, %v1174_v53  ;;  %v220_v2 = vrot.slane %v212_v60, %v1174_v53  ;;  %v211_v3 = vrot.slane %v197_v59, %v1174_v53  ;;  %v227_v18 = vrot.slane %v213_v63, %v1174_v53 }
  0xc0   :  { %v340_v31 = vrot.slane %v332_v17, %v1174_v53  ;;  %v347_v37 = vrot.slane %v333_v30, %v1174_v53  ;;  %v349_v44 = vcombine.high %v283_v27, %v299_v29  ;;  %v356_v45 = vrot.slane %v348_v36, %v1174_v53 }
  0xc1   :  { %v1188_v7 = vcombine.high %v172_v0, %v204_v1  ;;  %v1190_v8 = vcombine.low %v172_v0, %v204_v1  ;;  %v1201_v22 = vcombine.low %v188_v9, %v220_v2  ;;  %v1203_v23 = vcombine.low %v179_v11, %v211_v3 }
  0xc2   :  { %v1217_v10 = vcombine.low %v195_v26, %v227_v18  ;;  %v1219_v13 = vcombine.high %v179_v11, %v211_v3  ;;  %v1229_v40 = vcombine.low %v308_v35, %v340_v31  ;;  %v1231_v41 = vcombine.high %v188_v9, %v220_v2 }
  0xc3   :  { %v376_v19 = vsel %vm372_vm4, %v1188_v7, -inf  ;;  %v373_v21 = vsel %vm372_vm4, %v1190_v8, -inf  ;;  %v385_v32 = vsel %vm372_vm4, %v1201_v22, -inf  ;;  %v379_v33 = vsel %vm372_vm4, %v1203_v23, -inf }
  0xc4   :  { %377 = vmax.xlane.f32.xlu1 %v376_v19  ;;  %374 = vmax.xlane.f32.xlu0 %v373_v21  ;;  %v391_v38 = vsel %vm372_vm4, %v1217_v10, -inf  ;;  %v382_v39 = vsel %vm372_vm4, %v1219_v13, -inf  ;;  %v397_v46 = vsel %vm372_vm4, %v1229_v40, -inf  ;;  %v388_v47 = vsel %vm372_vm4, %v1231_v41, -inf }
  0xc5   :  { %v1239_v48 = vcombine.low %v315_v43, %v347_v37  ;;  %v1241_v49 = vcombine.high %v195_v26, %v227_v18  ;;  %v317_v50 = vcombine.high %v251_v14, %v267_v15  ;;  %v324_v51 = vrot.slane %v316_v42, %v1174_v53 }
  0xc6   :  { %v363_v52 = vrot.slane %v349_v44, %v1174_v53  ;;  %v1251_v57 = vcombine.high %v308_v35, %v340_v31  ;;  %v1260_v62 = vcombine.high %v315_v43, %v347_v37 }
  0xc7   :  { %v403_v54 = vsel %vm372_vm4, %v1239_v48, -inf  ;;  %v394_v55 = vsel %vm372_vm4, %v1241_v49, -inf  ;;  %v1249_v56 = vcombine.low %v324_v51, %v356_v45  ;;  %v331_v58 = vrot.slane %v317_v50, %v1174_v53 }
  0xc8   :  { %386 = vmax.xlane.f32.xlu1 %v385_v32  ;;  %380 = vmax.xlane.f32.xlu0 %v379_v33  ;;  %v400_v60 = vsel %vm372_vm4, %v1251_v57, -inf  ;;  %v406_v0 = vsel %vm372_vm4, %v1260_v62, -inf  ;;  %v1266_v1 = vcombine.high %v324_v51, %v356_v45 }
  0xc9   :  { %v409_v59 = vsel %vm372_vm4, %v1249_v56, -inf  ;;  %v1258_v61 = vcombine.low %v331_v58, %v363_v52  ;;  %v1270_v3 = vcombine.high %v331_v58, %v363_v52 }
  0xca   :  { %v412_v2 = vsel %vm372_vm4, %v1266_v1, -inf }
  0xcb   :  { %v415_v63 = vsel %vm372_vm4, %v1258_v61, -inf  ;;  %v418_v4 = vsel %vm372_vm4, %v1270_v3, -inf }
  0xcc   :  { %392 = vmax.xlane.f32.xlu1 %v391_v38  ;;  %383 = vmax.xlane.f32.xlu0 %v382_v39 }
  0xd0   :  { %398 = vmax.xlane.f32.xlu1 %v397_v46  ;;  %389 = vmax.xlane.f32.xlu0 %v388_v47 }
  0xd4   :  { %404 = vmax.xlane.f32.xlu1 %v403_v54  ;;  %395 = vmax.xlane.f32.xlu0 %v394_v55 }
  0xd8   :  { %410 = vmax.xlane.f32.xlu1 %v409_v59  ;;  %401 = vmax.xlane.f32.xlu0 %v400_v60 }
  0xdc   :  { %416 = vmax.xlane.f32.xlu1 %v415_v63  ;;  %407 = vmax.xlane.f32.xlu0 %v406_v0 }
  0xe0   :  { %413 = vmax.xlane.f32.xlu0 %v412_v2 }
  0xe4   :  { %419 = vmax.xlane.f32.xlu0 %v418_v4 }
 0x151   :  { %v378_v5 = vpop.xlane.xlu1 %377  ;;  %v375_v6 = vpop.xlane.xlu0 %374 }
 0x152   :  { %v422_v9 = vsub.f32 %v1188_v7, %v378_v5  ;;  %v421_v11 = vsub.f32 %v1190_v8, %v375_v6 }
 0x154   :  { %v439_v12 = vmul.f32 1.442695, %v422_v9  ;;  %v437_v16 = vmul.f32 1.442695, %v421_v11 }
 0x155   :  { %v387_v17 = vpop.xlane.xlu1 %386  ;;  %v381_v18 = vpop.xlane.xlu0 %380 }
 0x156   :  { %933 = vpow2.f32 %v439_v12  ;;  %v425_v19 = vsub.f32 %v1201_v22, %v387_v17  ;;  %v423_v21 = vsub.f32 %v1203_v23, %v381_v18 }
 0x157   :  { %935 = vpow2.f32 %v437_v16 }
 0x158   :  { %v441_v20 = vmul.f32 1.442695, %v423_v21  ;;  %v445_v24 = vmul.f32 1.442695, %v425_v19 }
 0x159   :  { %v393_v25 = vpop.xlane.xlu1 %392  ;;  %v384_v26 = vpop.xlane.xlu0 %383 }
 0x15a   :  { %v427_v27 = vsub.f32 %v1217_v10, %v393_v25  ;;  %v424_v7 = vsub.f32 %v1219_v13, %v384_v26  ;;  %937 = vpow2.f32 %v441_v20 }
 0x15b   :  { %939 = vpow2.f32 %v445_v24 }
 0x15c   :  { %v443_v8 = vmul.f32 1.442695, %v424_v7  ;;  %v449_v29 = vmul.f32 1.442695, %v427_v27 }
 0x15d   :  { %v399_v30 = vpop.xlane.xlu1 %398  ;;  %v390_v31 = vpop.xlane.xlu0 %389 }
 0x15e   :  { %v429_v32 = vsub.f32 %v1229_v40, %v399_v30  ;;  %v426_v22 = vsub.f32 %v1231_v41, %v390_v31  ;;  %941 = vpow2.f32 %v443_v8 }
 0x15f   :  { %943 = vpow2.f32 %v449_v29 }
 0x160   :  { %v1282_v23 = vpop.eup %933  ;;  %v447_v33 = vmul.f32 1.442695, %v426_v22  ;;  %v453_v10 = vmul.f32 1.442695, %v429_v32 }
 0x161   :  { %v1284_v14 = vpop.eup %935  ;;  %v405_v15 = vpop.xlane.xlu1 %404  ;;  %v472_v34 = vsel %vm372_vm4, %v1282_v23, 0.0 }
 0x162   :  { %v396_v13 = vpop.xlane.xlu0 %395  ;;  %v431_v35 = vsub.f32 %v1239_v48, %v405_v15  ;;  %473 = vadd.xlane.f32.xlu0 %v472_v34  ;;  %v469_v37 = vsel %vm372_vm4, %v1284_v14, 0.0  ;;  %945 = vpow2.f32 %v447_v33 }
 0x163   :  { %v428_v36 = vsub.f32 %v1241_v49, %v396_v13  ;;  %470 = vadd.xlane.f32.xlu1 %v469_v37  ;;  %947 = vpow2.f32 %v453_v10 }
 0x164   :  { %v1292_v39 = vpop.eup %937  ;;  %v457_v40 = vmul.f32 1.442695, %v431_v35 }
 0x165   :  { %v451_v38 = vmul.f32 1.442695, %v428_v36  ;;  %v411_v41 = vpop.xlane.xlu1 %410  ;;  %v475_v45 = vsel %vm372_vm4, %v1292_v39, 0.0  ;;  %v1298_v46 = vpop.eup %939 }
 0x166   :  { %v402_v42 = vpop.xlane.xlu0 %401  ;;  %v433_v43 = vsub.f32 %v1249_v56, %v411_v41  ;;  %v481_v55 = vsel %vm372_vm4, %v1298_v46, 0.0 }
 0x167   :  { %v430_v44 = vsub.f32 %v1251_v57, %v402_v42  ;;  %949 = vpow2.f32 %v451_v38  ;;  %476 = vadd.xlane.f32.xlu1 %v475_v45 }
 0x168   :  { %v1300_v48 = vpop.eup %941  ;;  %951 = vpow2.f32 %v457_v40  ;;  %v461_v49 = vmul.f32 1.442695, %v433_v43 }
 0x169   :  { %v455_v47 = vmul.f32 1.442695, %v430_v44  ;;  %v417_v50 = vpop.xlane.xlu1 %416  ;;  %v478_v56 = vsel %vm372_vm4, %v1300_v48, 0.0  ;;  %v1308_v57 = vpop.eup %943 }
 0x16a   :  { %v408_v51 = vpop.xlane.xlu0 %407  ;;  %v435_v52 = vsub.f32 %v1258_v61, %v417_v50  ;;  %479 = vadd.xlane.f32.xlu0 %v478_v56 }
 0x16b   :  { %v432_v54 = vsub.f32 %v1260_v62, %v408_v51  ;;  %953 = vpow2.f32 %v455_v47  ;;  %482 = vadd.xlane.f32.xlu1 %v481_v55  ;;  %v487_v62 = vsel %vm372_vm4, %v1308_v57, 0.0 }
 0x16c   :  { %v1310_v59 = vpop.eup %945  ;;  %955 = vpow2.f32 %v461_v49  ;;  %v465_v60 = vmul.f32 1.442695, %v435_v52 }
 0x16d   :  { %v459_v58 = vmul.f32 1.442695, %v432_v54  ;;  %v484_v0 = vsel %vm372_vm4, %v1310_v59, 0.0  ;;  %v1317_v2 = vpop.eup %947 }
 0x16e   :  { %v414_v63 = vpop.xlane.xlu0 %413  ;;  %485 = vadd.xlane.f32.xlu0 %v484_v0 }
 0x16f   :  { %v434_v61 = vsub.f32 %v1266_v1, %v414_v63  ;;  %957 = vpow2.f32 %v459_v58  ;;  %488 = vadd.xlane.f32.xlu1 %v487_v62  ;;  %v493_v1 = vsel %vm372_vm4, %v1317_v2, 0.0 }
 0x170   :  { %959 = vpow2.f32 %v465_v60 }
 0x171   :  { %v463_v4 = vmul.f32 1.442695, %v434_v61  ;;  %v1319_v5 = vpop.eup %949 }
 0x172   :  { %v420_v6 = vpop.xlane.xlu0 %419  ;;  %v490_v11 = vsel %vm372_vm4, %v1319_v5, 0.0  ;;  %v1326_v12 = vpop.eup %951 }
 0x173   :  { %961 = vpow2.f32 %v463_v4  ;;  %v436_v9 = vsub.f32 %v1270_v3, %v420_v6  ;;  %494 = vadd.xlane.f32.xlu1 %v493_v1  ;;  %491 = vadd.xlane.f32.xlu0 %v490_v11  ;;  %v499_v18 = vsel %vm372_vm4, %v1326_v12, 0.0 }
 0x175   :  { %v467_v16 = vmul.f32 1.442695, %v436_v9  ;;  %v1328_v17 = vpop.eup %953 }
 0x176   :  { %v496_v3 = vsel %vm372_vm4, %v1328_v17, 0.0  ;;  %v1334_v19 = vpop.eup %955 }
 0x177   :  { %963 = vpow2.f32 %v467_v16  ;;  %500 = vadd.xlane.f32.xlu1 %v499_v18  ;;  %497 = vadd.xlane.f32.xlu0 %v496_v3  ;;  %v505_v20 = vsel %vm372_vm4, %v1334_v19, 0.0 }
 0x179   :  { %v1336_v21 = vpop.eup %957 }
 0x17a   :  { %v502_v24 = vsel %vm372_vm4, %v1336_v21, 0.0  ;;  %v1342_v25 = vpop.eup %959 }
 0x17b   :  { %506 = vadd.xlane.f32.xlu1 %v505_v20  ;;  %503 = vadd.xlane.f32.xlu0 %v502_v24  ;;  %v511_v7 = vsel %vm372_vm4, %v1342_v25, 0.0 }
 0x17d   :  { %v1344_v26 = vpop.eup %961 }
 0x17e   :  { %v508_v27 = vsel %vm372_vm4, %v1344_v26, 0.0 }
 0x17f   :  { %512 = vadd.xlane.f32.xlu1 %v511_v7  ;;  %509 = vadd.xlane.f32.xlu0 %v508_v27 }
 0x181   :  { %v1350_v8 = vpop.eup %963 }
 0x182   :  { %v514_v29 = vsel %vm372_vm4, %v1350_v8, 0.0 }
 0x183   :  { %515 = vadd.xlane.f32.xlu0 %v514_v29 }
 0x1ef   :  { %v474_v31 = vpop.xlane.xlu0 %473 }
 0x1f0   :  { %v471_v30 = vpop.xlane.xlu1 %470  ;;  %965 = vrcp.f32 %v474_v31 }
 0x1f4   :  { %v477_v32 = vpop.xlane.xlu1 %476 }
 0x1f5   :  { %967 = vrcp.f32 %v477_v32 }
 0x1f7   :  { %v480_v33 = vpop.xlane.xlu0 %479 }
 0x1f8   :  { %v483_v22 = vpop.xlane.xlu1 %482  ;;  %969 = vrcp.f32 %v480_v33 }
 0x1f9   :  { %971 = vrcp.f32 %v471_v30 }
 0x1fa   :  { %v966_v35 = vpop.eup %965 }
 0x1fb   :  { %v486_v15 = vpop.xlane.xlu0 %485  ;;  %v1358_v44 = vmul.f32 %v966_v35, %v1282_v23 }
 0x1fc   :  { %v489_v10 = vpop.xlane.xlu1 %488 }
 0x1fd   :  { %973 = vrcp.f32 %v489_v10 }
 0x1fe   :  { %975 = vrcp.f32 %v483_v22 }
 0x1ff   :  { %977 = vrcp.f32 %v486_v15  ;;  %v968_v36 = vpop.eup %967 }
 0x200   :  { %v495_v13 = vpop.xlane.xlu1 %494  ;;  %v492_v34 = vpop.xlane.xlu0 %491  ;;  %v1361_v45 = vmul.f32 %v968_v36, %v1292_v39 }
 0x201   :  { %979 = vrcp.f32 %v492_v34 }
 0x202   :  { %v970_v37 = vpop.eup %969 }
 0x203   :  { %v1355_v41 = vmul.f32 %v970_v37, %v1300_v48  ;;  %v972_v42 = vpop.eup %971 }
 0x204   :  { %v501_v38 = vpop.xlane.xlu1 %500  ;;  %v498_v40 = vpop.xlane.xlu0 %497  ;;  %v1364_v52 = vmul.f32 %v972_v42, %v1284_v14 }
 0x205   :  { %981 = vrcp.f32 %v501_v38  ;;  %v565_v48 = vcombine.low %v1358_v44, %v1355_v41 }
 0x206   :  { %983 = vrcp.f32 %v498_v40  ;;  %v549_v39 = vcombine.low %v1364_v52, %v1361_v45 }
 0x207   :  { %v974_v43 = vpop.eup %973  ;;  %v573_v60 = vrot.slane %v565_v48, %v1162_v28 }
 0x208   :  { %v976_v47 = vpop.eup %975  ;;  %v507_v49 = vpop.xlane.xlu1 %506  ;;  %v1367_v54 = vmul.f32 %v974_v43, %v1308_v57 }
 0x209   :  { %v504_v50 = vpop.xlane.xlu0 %503  ;;  %v978_v51 = vpop.eup %977  ;;  %v1372_v23 = vmul.f32 %v976_v47, %v1298_v46  ;;  %v557_v46 = vrot.slane %v549_v39, %v1162_v28  ;;  %v550_v39 = vcombine.high %v1364_v52, %v1361_v45 }
 0x20a   :  { %985 = vrcp.f32 %v504_v50  ;;  %v538_v56 = vmul.f32 %v978_v51, %v1310_v59 }
 0x20b   :  { %987 = vrcp.f32 %v495_v13  ;;  %v980_v55 = vpop.eup %979  ;;  %v581_v63 = vcombine.low %v1372_v23, %v1367_v54  ;;  %v613_v4 = vcombine.low %v557_v46, %v573_v60  ;;  %v614_v20 = vcombine.high %v557_v46, %v573_v60 }
 0x20c   :  { %989 = vrcp.f32 %v507_v49  ;;  %v513_v14 = vpop.xlane.xlu1 %512  ;;  %v540_v57 = vmul.f32 %v980_v55, %v1319_v5  ;;  %v566_v49 = vcombine.high %v1358_v44, %v1355_v41  ;;  %v564_v46 = vrot.slane %v550_v39, %v1162_v28 }
 0x20d   :  { %v510_v58 = vpop.xlane.xlu0 %509  ;;  %991 = vrcp.f32 %v513_v14  ;;  %v589_v0 = vrot.slane %v581_v63, %v1162_v28  ;;  %v1385_v18 = vrot.slane %v613_v4, %v1174_v53 }
 0x20e   :  { %993 = vrcp.f32 %v510_v58  ;;  %v597_v61 = vcombine.low %v538_v56, %v540_v57  ;;  %v598_v38 = vcombine.high %v538_v56, %v540_v57 }
 0x20f   :  { %v982_v6 = vpop.eup %981 }
 0x210   :  { %v605_v59 = vrot.slane %v597_v61, %v1162_v28  ;;  %v984_v9 = vpop.eup %983  ;;  %v543_v29 = vmul.f32 %v982_v6, %v1326_v12  ;;  %v612_v55 = vrot.slane %v598_v38, %v1162_v28 }
 0x211   :  { %v516_v62 = vpop.xlane.xlu0 %515  ;;  %v542_v7 = vmul.f32 %v984_v9, %v1328_v17 }
 0x212   :  { %995 = vrcp.f32 %v516_v62  ;;  %v645_v5 = vcombine.low %v589_v0, %v605_v59  ;;  %v646_v1 = vcombine.high %v589_v0, %v605_v59 }
 0x214   :  { %v986_v11 = vpop.eup %985  ;;  %v1388_v3 = vrot.slane %v645_v5, %v1174_v53  ;;  %v660_v32 = vrot.slane %v646_v1, %v1174_v53 }
 0x215   :  { %v988_v16 = vpop.eup %987  ;;  %v544_v24 = vmul.f32 %v986_v11, %v1336_v21  ;;  %v628_v21 = vrot.slane %v614_v20, %v1174_v53 }
 0x216   :  { %v990_v27 = vpop.eup %989  ;;  %v678_v31 = vcombine.high %v1385_v18, %v1388_v3  ;;  %v541_v22 = vmul.f32 %v988_v16, %v1317_v2  ;;  %v677_v12 = vcombine.low %v1385_v18, %v1388_v3 }
 0x217   :  { %v992_v30 = vpop.eup %991  ;;  %v701_v10 = vcombine.low %v542_v7, %v544_v24  ;;  %v545_v17 = vmul.f32 %v990_v27, %v1334_v19  ;;  %v679_v35 = vcombine.low %v628_v21, %v660_v32  ;;  %v702_v43 = vcombine.high %v542_v7, %v544_v24 }
 0x218   :  { %v547_v33 = vmul.f32 %v992_v30, %v1342_v25  ;;  %v994_v15 = vpop.eup %993  ;;  %823 = vrot.lane.b32.xlu1 %v678_v31, %s1081_s12  ;;  %v685_v13 = vcombine.low %v541_v22, %v543_v29  ;;  %v686_v58 = vcombine.high %v541_v22, %v543_v29  ;;  %v680_v11 = vcombine.high %v628_v21, %v660_v32 }
 0x219   :  { %v546_v36 = vmul.f32 %v994_v15, %v1344_v26  ;;  %v709_v25 = vrot.slane %v701_v10, %v1162_v28  ;;  %v582_v26 = vcombine.high %v1372_v23, %v1367_v54  ;;  %v716_v41 = vrot.slane %v702_v43, %v1162_v28 }
 0x21a   :  { %v717_v37 = vcombine.low %v545_v17, %v547_v33  ;;  %v693_v40 = vrot.slane %v685_v13, %v1162_v28  ;;  %v718_v47 = vcombine.high %v545_v17, %v547_v33  ;;  %v580_v54 = vrot.slane %v566_v49, %v1162_v28 }
 0x21b   :  { %v596_v23 = vrot.slane %v582_v26, %v1162_v28  ;;  %v700_v59 = vrot.slane %v686_v58, %v1162_v28 }
 0x21c   :  { %v996_v34 = vpop.eup %995  ;;  %831 = vrot.lane.b32.xlu1 %v679_v35, %s1073_s0  ;;  %v750_v51 = vcombine.high %v693_v40, %v709_v25  ;;  %v749_v48 = vcombine.low %v693_v40, %v709_v25  ;;  %v732_v44 = vrot.slane %v718_v47, %v1162_v28  ;;  %v629_v5 = vcombine.low %v564_v46, %v580_v54 }
 0x21d   :  { %v548_v2 = vmul.f32 %v996_v34, %v1350_v8  ;;  %v725_v8 = vrot.slane %v717_v37, %v1162_v28  ;;  %v661_v61 = vcombine.low %v596_v23, %v612_v55  ;;  %v765_v9 = vcombine.low %v700_v59, %v716_v41 }
 0x21e   :  { %v764_v60 = vrot.slane %v750_v51, %v1174_v53  ;;  %v757_v45 = vrot.slane %v749_v48, %v1174_v53  ;;  %v637_v24 = vrot.slane %v629_v5, %v1174_v53  ;;  %v662_v30 = vcombine.high %v596_v23, %v612_v55 }
 0x21f   :  { %v733_v42 = vcombine.low %v546_v36, %v548_v2  ;;  %v734_v19 = vcombine.high %v546_v36, %v548_v2  ;;  %v669_v20 = vrot.slane %v661_v61, %v1174_v53  ;;  %v766_v31 = vcombine.high %v700_v59, %v716_v41 }
 0x220   :  { %v630_v32 = vcombine.high %v564_v46, %v580_v54  ;;  %v676_v15 = vrot.slane %v662_v30, %v1174_v53 }
 0x221   :  { %v741_v50 = vrot.slane %v733_v42, %v1162_v28  ;;  %v748_v57 = vrot.slane %v734_v19, %v1162_v28  ;;  %v773_v28 = vrot.slane %v765_v9, %v1174_v53  ;;  %v681_v7 = vcombine.low %v637_v24, %v669_v20 }
 0x222   :  { %v682_v33 = vcombine.high %v637_v24, %v669_v20  ;;  %v780_v21 = vrot.slane %v766_v31, %v1174_v53  ;;  %v644_v17 = vrot.slane %v630_v32, %v1174_v53 }
 0x223   :  { %v782_v56 = vcombine.high %v725_v8, %v741_v50  ;;  %v781_v14 = vcombine.low %v725_v8, %v741_v50  ;;  %v797_v4 = vcombine.low %v732_v44, %v748_v57  ;;  %v798_v29 = vcombine.high %v732_v44, %v748_v57 }
 0x224   :  { %v683_v34 = vcombine.low %v644_v17, %v676_v15  ;;  %v684_v36 = vcombine.high %v644_v17, %v676_v15 }
 0x225   :  { %v796_v63 = vrot.slane %v782_v56, %v1174_v53  ;;  %v789_v52 = vrot.slane %v781_v14, %v1174_v53  ;;  %v805_v16 = vrot.slane %v797_v4, %v1174_v53  ;;  %v812_v10 = vrot.slane %v798_v29, %v1174_v53 }
 0x227   :  { %v815_v62 = vcombine.low %v764_v60, %v796_v63  ;;  %v814_v0 = vcombine.high %v757_v45, %v789_v52  ;;  %v813_v6 = vcombine.low %v757_v45, %v789_v52  ;;  %v816_v1 = vcombine.high %v764_v60, %v796_v63 }
 0x228   :  { %v817_v27 = vcombine.low %v773_v28, %v805_v16  ;;  %v818_v22 = vcombine.high %v773_v28, %v805_v16  ;;  %v819_v13 = vcombine.low %v780_v21, %v812_v10  ;;  %v820_v35 = vcombine.high %v780_v21, %v812_v10 }
 0x229   :  { %833 = vrot.lane.b32.xlu1 %v815_v62, %s1073_s0  ;;  %825 = vrot.lane.b32.xlu0 %v814_v0, %s1081_s12 }
 0x22d   :  { %841 = vrot.lane.b32.xlu1 %v816_v1, %s1080_s11  ;;  %839 = vrot.lane.b32.xlu0 %v680_v11, %s1080_s11 }
 0x231   :  { %849 = vrot.lane.b32.xlu1 %v817_v27, %s1079_s10  ;;  %847 = vrot.lane.b32.xlu0 %v681_v7, %s1079_s10 }
 0x235   :  { %857 = vrot.lane.b32.xlu1 %v818_v22, %s1078_s9  ;;  %855 = vrot.lane.b32.xlu0 %v682_v33, %s1078_s9 }
 0x239   :  { %865 = vrot.lane.b32.xlu1 %v819_v13, %s1076_s8  ;;  %863 = vrot.lane.b32.xlu0 %v683_v34, %s1076_s8 }
 0x23d   :  { %873 = vrot.lane.b32.xlu1 %v820_v35, %s1077_s1  ;;  %871 = vrot.lane.b32.xlu0 %v684_v36, %s1077_s1 }
 0x28a   :  { %v824_v2 = vpop.permute.xlu1 %823 }
 0x28b   :  { %v877_v26 = vsel %vm372_vm4, %v677_v12, %v824_v2 }
 0x28e   :  { %v832_v25 = vpop.permute.xlu1 %831 }
 0x28f   :  { %v880_v8 = vsel %vm879_vm5, %v877_v26, %v832_v25 }
 0x29b   :  { %v834_v37 = vpop.permute.xlu1 %833  ;;  %v826_v38 = vpop.permute.xlu0 %825 }
 0x29c   :  { %v878_v49 = vsel %vm372_vm4, %v813_v6, %v826_v38 }
 0x29d   :  { %v881_v50 = vsel %vm879_vm5, %v878_v49, %v834_v37 }
 0x29f   :  { %v842_v40 = vpop.permute.xlu1 %841  ;;  %v840_v42 = vpop.permute.xlu0 %839 }
 0x2a0   :  { %v884_v39 = vsel %vm882_vm6, %v881_v50, %v842_v40  ;;  %v883_v55 = vsel %vm882_vm6, %v880_v8, %v840_v42 }
 0x2a3   :  { %v850_v19 = vpop.permute.xlu1 %849  ;;  %v848_v53 = vpop.permute.xlu0 %847 }
 0x2a4   :  { %v887_v56 = vsel %vm885_vm7, %v884_v39, %v850_v19  ;;  %v886_v14 = vsel %vm885_vm7, %v883_v55, %v848_v53 }
 0x2a7   :  { %v858_v43 = vpop.permute.xlu1 %857  ;;  %v856_v47 = vpop.permute.xlu0 %855 }
 0x2a8   :  { %v890_v58 = vsel %vm888_vm8, %v887_v56, %v858_v43  ;;  %v889_v57 = vsel %vm888_vm8, %v886_v14, %v856_v47 }
 0x2ab   :  { %v866_v51 = vpop.permute.xlu1 %865  ;;  %v864_v48 = vpop.permute.xlu0 %863 }
 0x2ac   :  { %v893_v41 = vsel %vm891_vm9, %v890_v58, %v866_v51  ;;  %v892_v18 = vsel %vm891_vm9, %v889_v57, %v864_v48 }
 0x2af   :  { %v874_v3 = vpop.permute.xlu1 %873  ;;  %v872_v12 = vpop.permute.xlu0 %871 }
 0x2b0   :  { %v896_v44 = vsel %vm894_vm10, %v893_v41, %v874_v3  ;;  %v895_v54 = vsel %vm894_vm10, %v892_v18, %v872_v12 }
 0x2b1   :  { %898 = vst [vmem:[#allocation7 + $0x8] sm:$0xff] %v896_v44  ;;  %897 = vst [vmem:[#allocation7] sm:$0xff] %v895_v54 }
 0x2b2   :  { %1052 = shalt.err (!%p1049_p6)
}
 0x2b3   :  { %s1053_s18 = scalar_lea.hbm %s1470_s2, 256 }
 0x2b4   :  { %p1054_p7 = scmp.ne.s32.totalorder %s1470_s2, %s1053_s18  ;;  %p1057_p8 = scmp.lt.u32.totalorder %s1053_s18, %s1470_s2 }
 0x2b6   :  { %p1059_p9 = pnand %p1057_p8, %p1054_p7 }
 0x2b8   :  { %1062 = shalt.err (!%p1059_p9)
}
 0x2b9   :  { %910 = dma.vmem_to_hbm [thread:$0]  %s905_s14, 256, %s1470_s2, [#allocation4], %s1070_s19, %s1070_s19, %s1071_s20  }
 0x2ba   :  { %1067 = dma.done.wait [#allocation4], 256  }
 0x2bb   :  { %1068 = vsyncadd [#allocation4], 4294967040 }
 0x2bc   :  { %914 = vsyncpa [#allocation3], 1 }
 0x2bd   :  { %915 = vsyncpa [#allocation6], 1 }
 0x2be   :  { %916 = vsyncpa [#allocation4], 1 }

</bundles_post_ra>
